<compile_context>
chip_gen: v5e
topology: v5e:2x2
jax: 0.10.0
libtpu: 0.0.40
codegen_flags: <defaults>
</compile_context>

<pallas_src>
import jax
import jax.numpy as jnp
from jax.experimental import pallas as pl
from jax.experimental.pallas import tpu as pltpu


def _te_proj_kernel(t_ref, w1_ref, b1_ref, w2_ref, b2_ref, o_ref, h_ref):
    # First Linear + SiLU: computed once per batch tile (first N tile only),
    # cached in the persistent f32 VMEM scratch h_ref of shape (TB, C).
    @pl.when(pl.program_id(1) == 0)
    def _():
        x = t_ref[...].astype(w1_ref.dtype)
        h = jnp.dot(x, w1_ref[...], preferred_element_type=jnp.float32)
        h = h + b1_ref[...].astype(jnp.float32)
        # SiLU in f32: x * sigmoid(x)  (sigmoid lowers to the EUP slot).
        h_ref[...] = h * jax.nn.sigmoid(h)

    # Second Linear on the current output-channel tile: (TB, C) @ (C, TN) + (1, TN)
    h = h_ref[...]
    out = jnp.dot(h.astype(w2_ref.dtype), w2_ref[...],
                  preferred_element_type=jnp.float32)
    out = out + b2_ref[...].astype(jnp.float32)
    o_ref[...] = out.astype(o_ref.dtype)


def _pick_tile(total, preferred, align):
    """Largest multiple of `align` that divides `total` and is <= `preferred`;
    falls back to the full extent (always legal as a block dim)."""
    if total <= preferred:
        return total
    t = (preferred // align) * align
    while t >= align:
        if total % t == 0:
            return t
        t -= align
    return total


def time_embedding_projection(t, w1, b1, w2, b2, *, tile_n=None, tile_b=None):
    """Fused Linear -> SiLU -> Linear.

    t:  (B, te_dim)
    w1: (te_dim, C)   b1: (1, C)
    w2: (C, C)        b2: (1, C)
    returns: (B, C)
    """
    B, D = t.shape
    C = w1.shape[1]

    # Output-channel tile: multiple of 128 (lane-dense stores), <= 512 so the
    # double-buffered (C, TN) weight tile fits the scoped-VMEM default on
    # v5e (16 MiB) / v6e (32 MiB) / v7x (32 MiB of 64 MiB physical).
    TN = tile_n if tile_n is not None else _pick_tile(C, 512, 128)
    # Batch tile: multiple of 8 sublanes (f32 accumulation / scratch).
    TB = tile_b if tile_b is not None else _pick_tile(B, 256, 8)

    grid = (B // TB, C // TN)

    in_specs = [
        pl.BlockSpec((TB, D), lambda bi, ni: (bi, 0)),   # t: resident across N
        pl.BlockSpec((D, C), lambda bi, ni: (0, 0)),     # w1: resident
        pl.BlockSpec((1, C), lambda bi, ni: (0, 0)),     # b1: resident
        pl.BlockSpec((C, TN), lambda bi, ni: (0, ni)),   # w2: streamed over N
        pl.BlockSpec((1, TN), lambda bi, ni: (0, ni)),   # b2: streamed over N
    ]
    out_specs = pl.BlockSpec((TB, TN), lambda bi, ni: (bi, ni))

    itemsize = lambda a: a.dtype.itemsize
    bytes_accessed = (t.size * itemsize(t) + w1.size * itemsize(w1)
                      + b1.size * itemsize(b1) + w2.size * itemsize(w2)
                      + b2.size * itemsize(b2) + B * C * itemsize(t))
    cost = pl.CostEstimate(
        flops=2 * B * D * C + 2 * B * C * C,
        transcendentals=B * C,           # sigmoid in SiLU
        bytes_accessed=bytes_accessed)

    return pl.pallas_call(
        _te_proj_kernel,
        out_shape=jax.ShapeDtypeStruct((B, C), t.dtype),
        grid_spec=pltpu.PrefetchScalarGridSpec(
            num_scalar_prefetch=0,
            grid=grid,
            in_specs=in_specs,
            out_specs=out_specs,
            scratch_shapes=[pltpu.VMEM((TB, C), jnp.float32)],  # cached hidden
        ),
        compiler_params=pltpu.CompilerParams(
            # N axis reuses the cached hidden -> must stay in-order ("arbitrary").
            dimension_semantics=("parallel", "arbitrary"),
            vmem_limit_bytes=32 * 1024 * 1024,
        ),
        cost_estimate=cost,
    )(t, w1, b1, w2, b2)


def _xavier_uniform(key, fan_in, fan_out, dtype=jnp.float32):
    # Matches torch.nn.init.xavier_uniform_ for a (fan_out, fan_in) weight;
    # stored transposed as (fan_in, fan_out) for the kernel.
    limit = (6.0 / (fan_in + fan_out)) ** 0.5
    return jax.random.uniform(key, (fan_in, fan_out), dtype=jnp.float32,
                              minval=-limit, maxval=limit).astype(dtype)


def init_params(key, te_dim, out_channels, dtype=jnp.float32):
    k1, k2 = jax.random.split(key, 2)
    w1 = _xavier_uniform(k1, te_dim, out_channels, dtype)
    b1 = jnp.zeros((1, out_channels), dtype)
    w2 = _xavier_uniform(k2, out_channels, out_channels, dtype)
    b2 = jnp.zeros((1, out_channels), dtype)
    return w1, b1, w2, b2


def _reference(t, w1, b1, w2, b2):
    # Pure-JAX reference mirroring the kernel's mixed-precision casts.
    x = t.astype(w1.dtype)
    h = jnp.dot(x, w1, preferred_element_type=jnp.float32) + b1.astype(jnp.float32)
    h = h * jax.nn.sigmoid(h)
    out = (jnp.dot(h.astype(w2.dtype), w2, preferred_element_type=jnp.float32)
           + b2.astype(jnp.float32))
    return out.astype(t.dtype)


if __name__ == "__main__":
    key = jax.random.PRNGKey(0)
    k_t, k_p, k_t2, k_p2 = jax.random.split(key, 4)

    # --- Test 1: small module-scale shapes, f32 weights, strict tolerance -----
    te_dim, out_channels, batch = 32, 128, 8
    t = jax.random.normal(k_t, (batch, te_dim), jnp.float32)
    w1, b1, w2, b2 = init_params(k_p, te_dim, out_channels, jnp.float32)

    out = jax.block_until_ready(time_embedding_projection(t, w1, b1, w2, b2))
    ref = _reference(t, w1, b1, w2, b2)
    assert out.shape == (batch, out_channels)
    assert jnp.allclose(out, ref, atol=1e-5, rtol=1e-5), "f32 mismatch vs reference"

    # --- Test 2: multi-tile grid over both axes (exercises the cached hidden
    #             scratch across N tiles), bf16 weight streaming ---------------
    te_dim2, out_channels2, batch2 = 64, 256, 16
    t2 = jax.random.normal(k_t2, (batch2, te_dim2), jnp.float32)
    w1b, b1b, w2b, b2b = init_params(k_p2, te_dim2, out_channels2, jnp.bfloat16)

    out2 = jax.block_until_ready(
        time_embedding_projection(t2, w1b, b1b, w2b, b2b, tile_n=128, tile_b=8))
    ref2 = _reference(t2, w1b, b1b, w2b, b2b)
    assert out2.shape == (batch2, out_channels2)
    assert jnp.allclose(out2, ref2, atol=2e-2, rtol=2e-2), "bf16 mismatch vs reference"

    print("KERNEL_OK")
</pallas_src>

<mosaic_0001>
module attributes {stable_mosaic.version = 11 : i64} {
  func.func @_te_proj_kernel(%arg0: i32, %arg1: i32, %arg2: memref<8x32xf32, #tpu.memory_space<vmem>>, %arg3: memref<32x128xf32, #tpu.memory_space<vmem>>, %arg4: memref<1x128xf32, #tpu.memory_space<vmem>>, %arg5: memref<128x128xf32, #tpu.memory_space<vmem>>, %arg6: memref<1x128xf32, #tpu.memory_space<vmem>>, %arg7: memref<8x128xf32, #tpu.memory_space<vmem>>, %arg8: memref<8x128xf32, #tpu.memory_space<vmem>>) attributes {dimension_semantics = [#tpu.dimension_semantics<parallel>, #tpu.dimension_semantics<arbitrary>], iteration_bounds = array<i64: 1, 1>, scalar_prefetch = 0 : i64, scratch_operands = 1 : i64, tpu.core_type = #tpu.core_type<tc>, window_params = [{transform_indices = @transform_0, window_bounds = array<i64: 8, 32>}, {pipeline_mode = #tpu.pipeline_mode<synchronous>, transform_indices = @transform_1, window_bounds = array<i64: 32, 128>}, {pipeline_mode = #tpu.pipeline_mode<synchronous>, transform_indices = @transform_2, window_bounds = array<i64: 1, 128>}, {transform_indices = @transform_3, window_bounds = array<i64: 128, 128>}, {transform_indices = @transform_4, window_bounds = array<i64: 1, 128>}, {transform_indices = @transform_5, window_bounds = array<i64: 8, 128>}]} {
    %c0_i32 = arith.constant 0 : i32
    %0 = arith.cmpi eq, %arg1, %c0_i32 : i32
    %1 = arith.extui %0 : i1 to i32
    %c0_i32_0 = arith.constant 0 : i32
    %2 = arith.cmpi ne, %1, %c0_i32_0 : i32
    scf.if %2 {
      %c0_8 = arith.constant 0 : index
      %c0_9 = arith.constant 0 : index
      %10 = vector.load %arg2[%c0_8, %c0_9] : memref<8x32xf32, #tpu.memory_space<vmem>>, vector<8x32xf32>
      %c0_10 = arith.constant 0 : index
      %c0_11 = arith.constant 0 : index
      %11 = vector.load %arg3[%c0_10, %c0_11] : memref<32x128xf32, #tpu.memory_space<vmem>>, vector<32x128xf32>
      %cst_12 = arith.constant dense<0.000000e+00> : vector<8x128xf32>
      %12 = tpu.matmul %10, %11, %cst_12 {dimension_numbers = #tpu.dot_dimension_numbers<[1], [0], [0], [1], [0, 0, 1, 1], [], []>} : vector<8x32xf32>, vector<32x128xf32>, vector<8x128xf32> -> vector<8x128xf32>
      %c0_13 = arith.constant 0 : index
      %c0_14 = arith.constant 0 : index
      %13 = vector.load %arg4[%c0_13, %c0_14] : memref<1x128xf32, #tpu.memory_space<vmem>>, vector<1x128xf32>
      %14 = vector.broadcast %13 : vector<1x128xf32> to vector<8x128xf32>
      %15 = arith.addf %12, %14 : vector<8x128xf32>
      %16 = arith.negf %15 : vector<8x128xf32>
      %17 = math.exp %16 : vector<8x128xf32>
      %cst_15 = arith.constant 1.000000e+00 : f32
      %18 = vector.broadcast %cst_15 : f32 to vector<8x128xf32>
      %19 = arith.addf %18, %17 : vector<8x128xf32>
      %20 = arith.divf %18, %19 : vector<8x128xf32>
      %21 = arith.mulf %15, %20 : vector<8x128xf32>
      %c0_16 = arith.constant 0 : index
      %c0_17 = arith.constant 0 : index
      %22 = vector.load %arg8[%c0_16, %c0_17] : memref<8x128xf32, #tpu.memory_space<vmem>>, vector<8x128xf32>
      tpu.vector_store %arg8[%c0_16, %c0_17], %21 {strides = array<i32>} : memref<8x128xf32, #tpu.memory_space<vmem>>, vector<8x128xf32>,
    } else {
    }
    %c0 = arith.constant 0 : index
    %c0_1 = arith.constant 0 : index
    %3 = vector.load %arg8[%c0, %c0_1] : memref<8x128xf32, #tpu.memory_space<vmem>>, vector<8x128xf32>
    %c0_2 = arith.constant 0 : index
    %c0_3 = arith.constant 0 : index
    %4 = vector.load %arg5[%c0_2, %c0_3] : memref<128x128xf32, #tpu.memory_space<vmem>>, vector<128x128xf32>
    %cst = arith.constant dense<0.000000e+00> : vector<8x128xf32>
    %5 = tpu.matmul %3, %4, %cst {dimension_numbers = #tpu.dot_dimension_numbers<[1], [0], [0], [1], [0, 0, 1, 1], [], []>} : vector<8x128xf32>, vector<128x128xf32>, vector<8x128xf32> -> vector<8x128xf32>
    %c0_4 = arith.constant 0 : index
    %c0_5 = arith.constant 0 : index
    %6 = vector.load %arg6[%c0_4, %c0_5] : memref<1x128xf32, #tpu.memory_space<vmem>>, vector<1x128xf32>
    %7 = vector.broadcast %6 : vector<1x128xf32> to vector<8x128xf32>
    %8 = arith.addf %5, %7 : vector<8x128xf32>
    %c0_6 = arith.constant 0 : index
    %c0_7 = arith.constant 0 : index
    %9 = vector.load %arg7[%c0_6, %c0_7] : memref<8x128xf32, #tpu.memory_space<vmem>>, vector<8x128xf32>
    tpu.vector_store %arg7[%c0_6, %c0_7], %8 {strides = array<i32>} : memref<8x128xf32, #tpu.memory_space<vmem>>, vector<8x128xf32>,
    return
  }
  func.func @transform_0(%arg0: i32, %arg1: i32) -> (i32, i32) {
    %c0_i32 = arith.constant 0 : i32
    %c0_i32_0 = arith.constant 0 : i32
    return %arg0, %c0_i32 : i32, i32
  }
  func.func @transform_1(%arg0: i32, %arg1: i32) -> (i32, i32) {
    %c0_i32 = arith.constant 0 : i32
    %c0_i32_0 = arith.constant 0 : i32
    %c0_i32_1 = arith.constant 0 : i32
    return %c0_i32, %c0_i32_0 : i32, i32
  }
  func.func @transform_2(%arg0: i32, %arg1: i32) -> (i32, i32) {
    %c0_i32 = arith.constant 0 : i32
    %c0_i32_0 = arith.constant 0 : i32
    %c0_i32_1 = arith.constant 0 : i32
    return %c0_i32, %c0_i32_0 : i32, i32
  }
  func.func @transform_3(%arg0: i32, %arg1: i32) -> (i32, i32) {
    %c0_i32 = arith.constant 0 : i32
    %c0_i32_0 = arith.constant 0 : i32
    return %c0_i32, %arg1 : i32, i32
  }
  func.func @transform_4(%arg0: i32, %arg1: i32) -> (i32, i32) {
    %c0_i32 = arith.constant 0 : i32
    %c0_i32_0 = arith.constant 0 : i32
    return %c0_i32, %arg1 : i32, i32
  }
  func.func @transform_5(%arg0: i32, %arg1: i32) -> (i32, i32) {
    %c0_i32 = arith.constant 0 : i32
    return %arg0, %arg1 : i32, i32
  }
}

</mosaic_0001>

<bundles_post_ra>
// kernel: tpu_custom_call.1
= control target key start
LH: loop header
LB: loop body
LE: loop exit
PB: predicated region body
PF: predicated region fallthrough
CT: control target
= control target key end

     0   :  { %10 = vsyncpa [#allocation4], 0  ;;  %s354_s0 = inlined_call_operand.hbm [shape: f32[8,32], index: 0, kind: input, shape index: {}]   ;;  %s355_s1 = inlined_call_operand.hbm [shape: f32[32,128], index: 1, kind: input, shape index: {}]   ;;  %s356_s2 = inlined_call_operand.vmem [shape: f32[1,128], index: 2, kind: input, shape index: {}]   ;;  %s357_s3 = inlined_call_operand.hbm [shape: f32[128,128], index: 3, kind: input, shape index: {}]   ;;  %s358_s4 = inlined_call_operand.vmem [shape: f32[1,128], index: 4, kind: input, shape index: {}]   ;;  %s359_s5 = inlined_call_operand.hbm [shape: f32[8,128], index: 5, kind: output, shape index: {}]  }
   0x1   :  { %11 = vsyncpa [#allocation7], 0  ;;  %s28_s20 = sshll.u32 %s355_s1, 4  ;;  %s29_s20 = int_to_ptr.hbm [resolvable:$true] %s28_s20 }
   0x2   :  { %12 = vsyncpa [#allocation5], 0  ;;  %s300_s21 = smov [#allocation6]   ;;  %s18_s25 = sshll.u32 %s354_s0, 4  ;;  %s19_s25 = int_to_ptr.hbm [resolvable:$true] %s18_s25 }
   0x3   :  { %s30_s22 = sshll.u32 %s300_s21, 4  ;;  %s301_s26 = smov 128   ;;  %s31_s22 = int_to_ptr.vmem [resolvable:$true] %s30_s22 }
   0x4   :  { %s302_s27 = smov 8   ;;  %s303_s28 = smov [#allocation3]  }
   0x5   :  { %36 = dma.hbm_to_vmem [thread:$0]  %s29_s20, 512, %s31_s22, [#allocation7], %s301_s26, %s301_s26, %s302_s27  }
   0x6   :  { %s20_s29 = sshll.u32 %s303_s28, 4  ;;  %s43_s7 = sshll.u32 %s357_s3, 4  ;;  %s21_s29 = int_to_ptr.vmem [resolvable:$true] %s20_s29  ;;  %s44_s7 = int_to_ptr.hbm [resolvable:$true] %s43_s7 }
   0x7   :  { %23 = dma.hbm_to_vmem [thread:$0]  %s19_s25, 128, %s21_s29, [#allocation4]  }
   0x8   :  { %s304_s1 = smov [#allocation8]  }
   0x9   :  { %s45_s8 = sshll.u32 %s304_s1, 4  ;;  %s46_s8 = int_to_ptr.vmem [resolvable:$true] %s45_s8 }
   0xa   :  { %51 = dma.hbm_to_vmem [thread:$0]  %s44_s7, 2048, %s46_s8, [#allocation7], %s301_s26, %s301_s26, %s302_s27  }
   0xb   :  { %294 = dma.done.wait [#allocation4], 128  }
   0xc   :  { %295 = vsyncadd [#allocation4], 4294967168 }
   0xd   :  { %296 = dma.done.wait [#allocation7], 2560  }
   0xe   :  { %297 = vsyncadd [#allocation7], 4294964736  ;;  %v74_v0 = vld [vmem:[#allocation6 + $0x18] sm:$0xff]  ;;  %v73_v1 = vld [vmem:[#allocation6 + $0x10] sm:$0xff]  ;;  %vm79_vm0 = vcmask 261120   ;;  %s305_s10 = smov [#allocation9]  }
   0xf   :  { %95 = vmatpush.msra.mxu0 %v74_v0  ;;  %v72_v2 = vld [vmem:[#allocation6 + $0x8] sm:$0xff]  ;;  %v71_v3 = vld [vmem:[#allocation6] sm:$0xff]  ;;  %v70_v4 = vld [vmem:[#allocation3] sm:$0xff]  ;;  %s171_s11 = sshll.u32 %s305_s10, 4  ;;  %s173_s14 = sshll.u32 %s359_s5, 4  ;;  %s172_s11 = int_to_ptr.vmem [resolvable:$true] %s171_s11  ;;  %s174_s14 = int_to_ptr.hbm [resolvable:$true] %s173_s14 }
  0x10   :  { %v140_v5 = vld [vmem:[#allocation8 + $0x78] sm:$0xff]  ;;  %v139_v6 = vld [vmem:[#allocation8 + $0x70] sm:$0xff]  ;;  %v138_v7 = vld [vmem:[#allocation8 + $0x68] sm:$0xff] }
  0x11   :  { %96 = vmatpush.msra.mxu0 %v73_v1  ;;  %145 = vmatpush.msra.mxu1 %v140_v5  ;;  %v137_v8 = vld [vmem:[#allocation8 + $0x60] sm:$0xff]  ;;  %v136_v9 = vld [vmem:[#allocation8 + $0x58] sm:$0xff]  ;;  %v135_v10 = vld [vmem:[#allocation8 + $0x50] sm:$0xff] }
  0x12   :  { %v134_v11 = vld [vmem:[#allocation8 + $0x48] sm:$0xff]  ;;  %v133_v12 = vld [vmem:[#allocation8 + $0x40] sm:$0xff]  ;;  %v132_v13 = vld [vmem:[#allocation8 + $0x38] sm:$0xff] }
  0x13   :  { %97 = vmatpush.msra.mxu0 %v72_v2  ;;  %146 = vmatpush.msra.mxu1 %v139_v6  ;;  %v131_v14 = vld [vmem:[#allocation8 + $0x30] sm:$0xff]  ;;  %v130_v15 = vld [vmem:[#allocation8 + $0x28] sm:$0xff]  ;;  %v129_v16 = vld [vmem:[#allocation8 + $0x20] sm:$0xff] }
  0x14   :  { %v128_v17 = vld [vmem:[#allocation8 + $0x18] sm:$0xff]  ;;  %v127_v18 = vld [vmem:[#allocation8 + $0x10] sm:$0xff]  ;;  %v126_v19 = vld [vmem:[#allocation8 + $0x8] sm:$0xff] }
  0x15   :  { %98 = vmatpush.msra.mxu0 %v71_v3  ;;  %147 = vmatpush.msra.mxu1 %v138_v7  ;;  %v192_v20 = vld [vmem:[%s356_s2] ss:$0 sm:$0xff]  ;;  %v125_v21 = vld [vmem:[#allocation8] sm:$0xff] }
  0x16   :  { %184 = vmatmul.msk.f32.vlgmr.msra.gmra.mxu0 %vm79_vm0, %v70_v4  ;;  %v193_v38 = vld [vmem:[%s358_s4] ss:$0 sm:$0xff] }
  0x17   :  { %148 = vmatpush.msra.mxu1 %v137_v8 }
  0x19   :  { %149 = vmatpush.msra.mxu1 %v136_v9 }
  0x1b   :  { %150 = vmatpush.msra.mxu1 %v135_v10 }
  0x1d   :  { %151 = vmatpush.msra.mxu1 %v134_v11 }
  0x1f   :  { %152 = vmatpush.msra.mxu1 %v133_v12 }
  0x21   :  { %153 = vmatpush.msra.mxu1 %v132_v13 }
  0x23   :  { %154 = vmatpush.msra.mxu1 %v131_v14 }
  0x25   :  { %155 = vmatpush.msra.mxu1 %v130_v15 }
  0x27   :  { %156 = vmatpush.msra.mxu1 %v129_v16 }
  0x29   :  { %157 = vmatpush.msra.mxu1 %v128_v17 }
  0x2b   :  { %158 = vmatpush.msra.mxu1 %v127_v18 }
  0x2d   :  { %159 = vmatpush.msra.mxu1 %v126_v19 }
  0x2f   :  { %160 = vmatpush.msra.mxu1 %v125_v21 }
  0x93   :  { %v100_v22 = vpop.f32.mrf.mxu0 }
  0x94   :  { %v101_v23 = vadd.f32 %v192_v20, %v100_v22 }
  0x96   :  { %v185_v24 = vmul.f32 -1.442695, %v101_v23 }
  0x98   :  { %194 = vpow2.f32 %v185_v24 }
  0x9e   :  { %v195_v25 = vpop.eup %194 }
  0x9f   :  { %v106_v26 = vadd.f32 1.0, %v195_v25 }
  0xa1   :  { %196 = vrcp.f32 %v106_v26  ;;  %v118_v30 = vand.u32 2147483648, %v106_v26  ;;  %v116_v32 = vand.u32 2147483647, %v106_v26  ;;  %vm112_vm2 = vweird.f32 %v106_v26 }
  0xa3   :  { %v119_v34 = vor.u32 1.1754944e-38, %v118_v30  ;;  %vm117_vm4 = vcmp.eq.f32.partialorder %v116_v32, 8.507059e+37 }
  0xa7   :  { %v197_v27 = vpop.eup %196 }
  0xa8   :  { %v108_v28 = vmul.f32 %v197_v27, %v106_v26  ;;  %vm113_vm1 = vweird.f32 %v197_v27 }
  0xa9   :  { %vm114_vm3 = vmor %vm112_vm2, %vm113_vm1 }
  0xaa   :  { %v109_v29 = vsub.f32 1.0, %v108_v28 }
  0xac   :  { %v110_v31 = vmul.f32 %v197_v27, %v109_v29 }
  0xae   :  { %v111_v33 = vadd.f32 %v197_v27, %v110_v31 }
  0xb0   :  { %v115_v35 = vsel %vm114_vm3, %v197_v27, %v111_v33 }
  0xb1   :  { %v120_v36 = vsel %vm117_vm4, %v119_v34, %v115_v35 }
  0xb2   :  { %v122_v37 = vmul.f32 %v120_v36, %v101_v23 }
  0xb4   :  { %161 = vmatmul.f32.vlgmr.msra.gmra.mxu1 %v122_v37 }
 0x131   :  { %v162_v39 = vpop.f32.mrf.mxu1 }
 0x132   :  { %v163_v40 = vadd.f32 %v193_v38, %v162_v39 }
 0x134   :  { %165 = vst [vmem:[#allocation9] sm:$0xff] %v163_v40 }
 0x135   :  { %176 = dma.vmem_to_hbm [thread:$0]  %s172_s11, 128, %s174_s14, [#allocation5]  }
 0x136   :  { %298 = dma.done.wait [#allocation5], 128  }
 0x137   :  { %299 = vsyncadd [#allocation5], 4294967168 }
 0x138   :  { %181 = vsyncpa [#allocation4], 1 }
 0x139   :  { %182 = vsyncpa [#allocation7], 1 }
 0x13a   :  { %183 = vsyncpa [#allocation5], 1 }

</bundles_post_ra>
